<compile_context>
chip_gen: v5e
topology: v5e:2x2
jax: 0.10.0
libtpu: 0.0.40
codegen_flags: <defaults>
</compile_context>

<pallas_src>
from typing import List

import jax
import jax.numpy as jnp
from jax.experimental import pallas as pl
from jax.experimental.pallas import tpu as pltpu

_MATMUL_DTYPE = jnp.float32   # set to jnp.bfloat16 for bf16 MXU operands


def _pad8(n: int) -> int:
    return ((n + 7) // 8) * 8


# ---------------------------------------------------------------------------
# Parameter construction (deterministic, synthetic, raw per-tap layout)
# ---------------------------------------------------------------------------
def init_params(key, channels: List[int], res_channels: int, dil_layer: int,
                num_blocks: int):
    """Flat list of raw params (PyTorch-style taps): consumed by pack_params
    and by the plain-JAX reference.

    - CausalConv layer: w0 (out,in), w1 (out,in), b (1,out)   [kernel_size=2]
    - per block: f branch (dil_layer+1 layers), g branch (dil_layer+1 layers),
      then scale 1x1 conv: w (out,in), b (1,out)
    """
    params = []
    keys = iter(jax.random.split(key, 1024))

    def conv_k2(k, cin, cout):
        k0, k1, k2 = jax.random.split(k, 3)
        s = 1.0 / jnp.sqrt(jnp.float32(cin * 2))
        return [jax.random.normal(k0, (cout, cin), jnp.float32) * s,
                jax.random.normal(k1, (cout, cin), jnp.float32) * s,
                jax.random.normal(k2, (1, cout), jnp.float32) * s]

    def conv_k1(k, cin, cout):
        k0, k1 = jax.random.split(k, 2)
        s = 1.0 / jnp.sqrt(jnp.float32(cin))
        return [jax.random.normal(k0, (cout, cin), jnp.float32) * s,
                jax.random.normal(k1, (1, cout), jnp.float32) * s]

    in_ch = [1] + list(channels[:-1])
    for cin, cout in zip(in_ch, channels):
        params += conv_k2(next(keys), cin, cout)

    C = channels[-1]
    for _ in range(num_blocks):
        for _branch in range(2):                       # f then g
            cins = [C] + [res_channels] * dil_layer
            couts = [res_channels] * dil_layer + [C]
            for cin, cout in zip(cins, couts):
                params += conv_k2(next(keys), cin, cout)
        params += conv_k1(next(keys), C, C)            # scale (1x1 conv)
    return params


# ---------------------------------------------------------------------------
# Wrapper-side weight packing: one weight slab + one bias slab + static plan
# ---------------------------------------------------------------------------
def pack_params(params, channels, res_channels, dil_layer, num_blocks):
    it = iter(params)
    n_dil = dil_layer + 1
    C = channels[-1]
    C_pad = _pad8(C)
    r_pad = _pad8(res_channels)

    entries = []                                       # (W block, bias block)

    def add(w, b):
        entries.append((w.astype(jnp.float32), b.astype(jnp.float32)))
        return len(entries) - 1

    def pad2(a, rows, cols):
        out = jnp.zeros((rows, cols), jnp.float32)
        return out.at[:a.shape[0], :a.shape[1]].set(a)

    def take_k2():
        w0, w1, b = next(it), next(it), next(it)
        return w0, w1, b[0]                            # (cout,cin)x2, (cout,)

    def packed_k2(w0, w1, b, cout_p, cin_p):
        w = jnp.concatenate([pad2(w0, cout_p, cin_p),
                             pad2(w1, cout_p, cin_p)], axis=1)
        return w, pad2(b[:, None], cout_p, 1)

    # ---- Causal stack -------------------------------------------------------
    c0_p = _pad8(channels[0])
    w0, w1, b = take_k2()                              # cin == 1
    idx_c0 = add(jnp.concatenate([pad2(w0, c0_p, 1), pad2(w1, c0_p, 1)], axis=1),
                 pad2(b[:, None], c0_p, 1))
    causal = []
    for j in range(1, len(channels)):
        cin_p, cout_p = _pad8(channels[j - 1]), _pad8(channels[j])
        w0, w1, b = take_k2()
        w, bb = packed_k2(w0, w1, b, cout_p, cin_p)
        causal.append(add(w, bb))

    # ---- Gated residual blocks ----------------------------------------------
    blocks = []
    for _ in range(num_blocks):
        f_raw = [take_k2() for _ in range(n_dil)]
        g_raw = [take_k2() for _ in range(n_dil)]

        # depth 0: f and g share the same input -> concat along cout.
        wf, bf = packed_k2(*f_raw[0], r_pad, C_pad)
        wg, bg = packed_k2(*g_raw[0], r_pad, C_pad)
        fg0 = add(jnp.concatenate([wf, wg], axis=0),
                  jnp.concatenate([bf, bg], axis=0))

        # depths 1..dil_layer: block-diagonal fused f/g step.
        # Stacked input layout is [f_sh; g_sh; f; g]  (4*cin_p rows).
        fg_rest = []
        for i in range(1, n_dil):
            cout_p = C_pad if i == n_dil - 1 else r_pad
            cin_p = r_pad
            gs = 0.5 if i == n_dil - 1 else 1.0        # sigmoid(g)=0.5*tanh(g/2)+0.5
            wf0, wf1, bf = f_raw[i]
            wg0, wg1, bg = g_raw[i]
            W = jnp.zeros((2 * cout_p, 4 * cin_p), jnp.float32)
            W = W.at[:cout_p, 0 * cin_p:1 * cin_p].set(pad2(wf0, cout_p, cin_p))
            W = W.at[:cout_p, 2 * cin_p:3 * cin_p].set(pad2(wf1, cout_p, cin_p))
            W = W.at[cout_p:, 1 * cin_p:2 * cin_p].set(pad2(wg0, cout_p, cin_p) * gs)
            W = W.at[cout_p:, 3 * cin_p:4 * cin_p].set(pad2(wg1, cout_p, cin_p) * gs)
            bb = jnp.concatenate([pad2(bf[:, None], cout_p, 1),
                                  pad2(bg[:, None], cout_p, 1) * gs], axis=0)
            fg_rest.append(add(W, bb))

        sw, sb = next(it), next(it)                    # (C,C), (1,C)
        sc = add(pad2(sw, C_pad, C_pad), pad2(sb[0][:, None], C_pad, 1))
        blocks.append(dict(fg0=fg0, fg=fg_rest, scale=sc))

    # ---- Assemble the two slabs ---------------------------------------------
    kmax = max(w.shape[1] for w, _ in entries)
    w_slab = jnp.concatenate([pad2(w, w.shape[0], kmax) for w, _ in entries],
                             axis=0)
    b_slab = jnp.concatenate([b for _, b in entries], axis=0)

    offs, off = [], 0
    for w, _ in entries:
        offs.append((off, w.shape[0]))                 # 8-aligned row ranges
        off += w.shape[0]

    plan = dict(
        C=C, C_pad=C_pad,
        c0=offs[idx_c0],
        causal=[offs[i] for i in causal],
        blocks=[dict(fg0=offs[d["fg0"]],
                     fg=[offs[i] for i in d["fg"]],
                     scale=offs[d["scale"]]) for d in blocks],
    )
    return w_slab, b_slab, plan


# ---------------------------------------------------------------------------
# Pallas kernel
# ---------------------------------------------------------------------------
def make_kernel(plan, T: int):
    C, C_pad = plan["C"], plan["C_pad"]

    def kernel(x_ref, w_ref, b_ref, o_ref):
        N = x_ref.shape[-1]                            # B_TILE * T lanes
        # Per-batch-element time index: batch is folded into the lane axis,
        # so the causal masks must use (lane % T), not the raw lane index.
        t_mod = jax.lax.broadcasted_iota(jnp.int32, (1, N), 1) % T
        mask_cache = {}

        def lt_mask(d):
            if d not in mask_cache:
                mask_cache[d] = t_mod < d
            return mask_cache[d]

        def shift_t(h, d):
            # h[:, t] -> h[:, t-d] per batch element, zero-filled for t < d.
            # XLU lane rotate + one VPU select; the mask also kills roll
            # wrap-around across batch boundaries.
            rolled = pltpu.roll(h, shift=d, axis=1)
            return jnp.where(lt_mask(d), 0.0, rolled)

        # Point-of-use static slab slices (no whole-kernel weight live ranges).
        def load_w(ent, k):
            off, rows = ent
            return w_ref[off:off + rows, 0:k]

        def load_b(ent):
            off, rows = ent
            return b_ref[off:off + rows, :]

        def tap2(h, d, ent):
            # Fused two-tap dilated causal conv (pad-before-conv semantics):
            #   y[:, t] = W @ [h[:, t-d]; h[:, t]] + b      (h[:, t-d]=0, t<d)
            # For fused f/g layers, h = [f; g] and W is block-diagonal.
            # (Concat-K form; on v7x MRB accumulation the two-dot form could
            #  drop the sublane concat — keep and measure.)
            h_sh = shift_t(h, d)
            stacked = jnp.concatenate([h_sh, h], axis=0)
            w = load_w(ent, stacked.shape[0])
            b = load_b(ent)
            return jnp.dot(w.astype(_MATMUL_DTYPE),
                           stacked.astype(_MATMUL_DTYPE),
                           preferred_element_type=jnp.float32) + b

        # ---- CausalConv stack: conv (dil=1, no pad), then left-pad the OUTPUT
        # by one sample => outer mask at t == 0.  Layer 0 has cin == 1, so it
        # stays on the VPU (broadcast FMA) instead of a K=2 MXU pass.
        x0 = x_ref[...]                                # (1, N)
        wb = load_w(plan["c0"], 2)                     # (c0_pad, 2) = [w0 | w1]
        b0 = load_b(plan["c0"])
        y = wb[:, 0:1] * shift_t(x0, 1) + wb[:, 1:2] * x0 + b0
        h = jnp.where(lt_mask(1), 0.0, y)
        for ent in plan["causal"]:
            h = jnp.where(lt_mask(1), 0.0, tap2(h, 1, ent))

        # ---- Stacked gated residual blocks + skip-sum.  h: (C_pad, N).
        acc = jnp.zeros((C_pad, N), jnp.float32)
        for blk in plan["blocks"]:
            fg = tap2(h, 1, blk["fg0"])                # [f; g]   (2*r_pad, N)
            d = 2
            for ent in blk["fg"]:                      # fused f/g per depth
                fg = tap2(fg, d, ent)
                d *= 2
            # g half was pre-scaled by 0.5 in pack_params:
            #   z = tanh(f) * sigmoid(g) = tanh(f) * (0.5*tanh(g/2) + 0.5)
            t = jnp.tanh(fg)                           # (2*C_pad, N), one EUP pass
            z = t[:C_pad] * (0.5 * t[C_pad:] + 0.5)
            sw = load_w(blk["scale"], C_pad)
            sb = load_b(blk["scale"])
            h = jnp.dot(sw.astype(_MATMUL_DTYPE), z.astype(_MATMUL_DTYPE),
                        preferred_element_type=jnp.float32) + sb + h
            acc = acc + h                              # skip.append(x)
        o_ref[...] = acc[:C]                           # sum over skips

    return kernel


def stacked_gates(x, params, channels, res_channels, dil_layer, num_blocks,
                  b_tile=None):
    """x: (B, T) -> (B, C, T) float32 (PyTorch NCT output layout)."""
    B, T = x.shape
    C = channels[-1]

    w_slab, b_slab, plan = pack_params(params, channels, res_channels,
                                       dil_layer, num_blocks)

    # Fold a tile of batch elements into the lane (N) axis; keep >=2 grid
    # steps when possible so v7x's two TensorCores both get work.
    if b_tile is None:
        b_tile = max(1, min(B, max(1, 512 // T)))
        while b_tile > 1 and pl.cdiv(B, b_tile) < 2:
            b_tile //= 2
    G = pl.cdiv(B, b_tile)
    B_pad = G * b_tile

    xp = x.astype(jnp.float32)
    if B_pad != B:
        xp = jnp.pad(xp, ((0, B_pad - B), (0, 0)))
    N = b_tile * T
    x_in = xp.reshape(G, 1, N)                         # batch folded into lanes

    kernel = make_kernel(plan, T)

    in_specs = [
        pl.BlockSpec((None, 1, N), lambda g: (g, 0, 0)),
        # Weight / bias slabs: constant index maps -> DMA'd once, resident in
        # VMEM across every grid step.
        pl.BlockSpec(w_slab.shape, lambda g: (0, 0)),
        pl.BlockSpec(b_slab.shape, lambda g: (0, 0)),
    ]
    out_specs = pl.BlockSpec((None, C, N), lambda g: (g, 0, 0))

    out = pl.pallas_call(
        kernel,
        out_shape=jax.ShapeDtypeStruct((G, C, N), jnp.float32),
        grid=(G,),
        in_specs=in_specs,
        out_specs=out_specs,
        compiler_params=pltpu.CompilerParams(
            dimension_semantics=("parallel",)),
    )(x_in, w_slab, b_slab)

    # Layout plumbing only: un-fold batch from the lane axis.
    out = out.reshape(G, C, b_tile, T).transpose(0, 2, 1, 3).reshape(B_pad, C, T)
    return out[:B]


# ---------------------------------------------------------------------------
# Plain-JAX reference (mirrors the PyTorch module exactly, raw params)
# ---------------------------------------------------------------------------
def ref_stacked_gates(x, params, channels, res_channels, dil_layer, num_blocks):
    it = iter(params)

    def take_k2():
        w0, w1, b = next(it), next(it), next(it)
        return jnp.stack([w0, w1], axis=-1), b[0]      # (out,in,2), (out,)

    def take_k1():
        w, b = next(it), next(it)
        return w[:, :, None], b[0]                     # (out,in,1), (out,)

    def conv1d(h, w, b, dilation, pad_left):
        y = jax.lax.conv_general_dilated(
            h, w, window_strides=(1,), padding=[(pad_left, 0)],
            rhs_dilation=(dilation,),
            dimension_numbers=("NCH", "OIH", "NCH"))
        return y + b[None, :, None]

    h = x.astype(jnp.float32)[:, None, :]              # (B, 1, T)
    for _ in range(len(channels)):                     # CausalConv
        w, b = take_k2()
        y = conv1d(h, w, b, dilation=1, pad_left=0)    # length T-1
        h = jnp.pad(y, ((0, 0), (0, 0), (1, 0)))       # pad AFTER conv

    def dcc(hin):
        out = hin
        for i in range(dil_layer + 1):
            w, b = take_k2()
            d = 2 ** i
            out = conv1d(out, w, b, dilation=d, pad_left=d)  # pad BEFORE conv
        return out

    acc = jnp.zeros_like(h)
    for _ in range(num_blocks):
        f_out = dcc(h)
        g_out = dcc(h)
        sw, sb = take_k1()
        z = jnp.tanh(f_out) * jax.nn.sigmoid(g_out)
        h = conv1d(z, sw, sb, dilation=1, pad_left=0) + h
        acc = acc + h
    return acc                                         # (B, C, T)


# ---------------------------------------------------------------------------
if __name__ == "__main__":
    channels = [4, 8]
    res_channels = 8
    dil_layer = 2
    num_blocks = 2
    B, T = 4, 128    # -> b_tile=2, grid=2 parallel steps, N=256 lanes/matmul

    key = jax.random.PRNGKey(0)
    kx, kp = jax.random.split(key)
    x = jax.random.normal(kx, (B, T), jnp.float32)
    params = init_params(kp, channels, res_channels, dil_layer, num_blocks)

    out = jax.block_until_ready(
        stacked_gates(x, params, channels, res_channels, dil_layer, num_blocks))
    ref = jax.block_until_ready(
        ref_stacked_gates(x, params, channels, res_channels, dil_layer,
                          num_blocks))

    assert out.shape == (B, channels[-1], T), out.shape
    err = float(jnp.max(jnp.abs(out - ref)))
    if not jnp.allclose(out, ref, atol=5e-4, rtol=5e-4):
        raise AssertionError(
            f"Pallas kernel mismatch vs reference: max abs err {err}")
    print("KERNEL_OK")
</pallas_src>

<mosaic_0001>
module attributes {stable_mosaic.version = 11 : i64} {
  func.func @kernel(%arg0: i32, %arg1: memref<1x1x256xf32, #tpu.memory_space<vmem>>, %arg2: memref<128x32xf32, #tpu.memory_space<vmem>>, %arg3: memref<128x1xf32, #tpu.memory_space<vmem>>, %arg4: memref<1x8x256xf32, #tpu.memory_space<vmem>>) attributes {dimension_semantics = [#tpu.dimension_semantics<parallel>], iteration_bounds = array<i64: 2>, scalar_prefetch = 0 : i64, scratch_operands = 0 : i64, tpu.core_type = #tpu.core_type<tc>, window_params = [{transform_indices = @transform_0, window_bounds = array<i64: 1, 1, 256>}, {pipeline_mode = #tpu.pipeline_mode<synchronous>, transform_indices = @transform_1, window_bounds = array<i64: 128, 32>}, {pipeline_mode = #tpu.pipeline_mode<synchronous>, transform_indices = @transform_2, window_bounds = array<i64: 128, 1>}, {transform_indices = @transform_3, window_bounds = array<i64: 1, 8, 256>}]} {
    %0 = tpu.iota {dimensions = array<i32: 1>} : vector<1x256xi32>
    %c128_i32 = arith.constant 128 : i32
    %c0_i32 = arith.constant 0 : i32
    %1 = arith.cmpi eq, %c128_i32, %c0_i32 : i32
    %c1_i32 = arith.constant 1 : i32
    %2 = arith.select %1, %c1_i32, %c128_i32 : i32
    %3 = vector.broadcast %2 : i32 to vector<1x256xi32>
    %4 = arith.remsi %0, %3 : vector<1x256xi32>
    %c0_i32_0 = arith.constant 0 : i32
    %5 = vector.broadcast %c0_i32_0 : i32 to vector<1x256xi32>
    %6 = arith.cmpi ne, %4, %5 : vector<1x256xi32>
    %c0_i32_1 = arith.constant 0 : i32
    %7 = vector.broadcast %c0_i32_1 : i32 to vector<1x256xi32>
    %8 = arith.cmpi slt, %4, %7 : vector<1x256xi32>
    %c0_i32_2 = arith.constant 0 : i32
    %9 = arith.cmpi slt, %2, %c0_i32_2 : i32
    %10 = vector.broadcast %9 : i1 to vector<1x256xi1>
    %11 = vector.broadcast %10 : vector<1x256xi1> to vector<1x256xi1>
    %12 = arith.xori %8, %11 : vector<1x256xi1>
    %13 = arith.andi %12, %6 : vector<1x256xi1>
    %14 = vector.broadcast %2 : i32 to vector<1x256xi32>
    %15 = arith.addi %4, %14 : vector<1x256xi32>
    %16 = arith.select %13, %15, %4 : vector<1x256xi1>, vector<1x256xi32>
    %c0 = arith.constant 0 : index
    %c0_3 = arith.constant 0 : index
    %c0_4 = arith.constant 0 : index
    %17 = vector.load %arg1[%c0, %c0_3, %c0_4] : memref<1x1x256xf32, #tpu.memory_space<vmem>>, vector<1x1x256xf32>
    %18 = vector.shape_cast %17 : vector<1x1x256xf32> to vector<1x256xf32>
    %c0_5 = arith.constant 0 : index
    %c0_6 = arith.constant 0 : index
    %19 = vector.load %arg2[%c0_5, %c0_6] : memref<128x32xf32, #tpu.memory_space<vmem>>, vector<8x2xf32>
    %c0_7 = arith.constant 0 : index
    %c0_8 = arith.constant 0 : index
    %20 = vector.load %arg3[%c0_7, %c0_8] : memref<128x1xf32, #tpu.memory_space<vmem>>, vector<8x1xf32>
    %21 = vector.extract_strided_slice %19 {offsets = [0, 0], sizes = [8, 1], strides = [1, 1]} : vector<8x2xf32> to vector<8x1xf32>
    %c1_i32_9 = arith.constant 1 : i32
    %22 = tpu.dynamic_rotate %18 by %c1_i32_9 dim 1 : vector<1x256xf32>, i32 -> vector<1x256xf32>
    %c1_i32_10 = arith.constant 1 : i32
    %23 = vector.broadcast %c1_i32_10 : i32 to vector<1x256xi32>
    %24 = arith.cmpi slt, %16, %23 : vector<1x256xi32>
    %cst = arith.constant 0.000000e+00 : f32
    %25 = vector.broadcast %cst : f32 to vector<1x256xf32>
    %26 = arith.select %24, %25, %22 : vector<1x256xi1>, vector<1x256xf32>
    %27 = vector.broadcast %21 : vector<8x1xf32> to vector<8x256xf32>
    %28 = vector.broadcast %26 : vector<1x256xf32> to vector<8x256xf32>
    %29 = arith.mulf %27, %28 : vector<8x256xf32>
    %30 = vector.extract_strided_slice %19 {offsets = [0, 1], sizes = [8, 1], strides = [1, 1]} : vector<8x2xf32> to vector<8x1xf32>
    %31 = vector.broadcast %30 : vector<8x1xf32> to vector<8x256xf32>
    %32 = vector.broadcast %18 : vector<1x256xf32> to vector<8x256xf32>
    %33 = arith.mulf %31, %32 : vector<8x256xf32>
    %34 = arith.addf %29, %33 : vector<8x256xf32>
    %35 = vector.broadcast %20 : vector<8x1xf32> to vector<8x256xf32>
    %36 = arith.addf %34, %35 : vector<8x256xf32>
    %cst_11 = arith.constant 0.000000e+00 : f32
    %37 = vector.shape_cast %24 : vector<1x256xi1> to vector<1x256xi1>
    %38 = vector.broadcast %37 : vector<1x256xi1> to vector<8x256xi1>
    %39 = vector.broadcast %cst_11 : f32 to vector<8x256xf32>
    %40 = arith.select %38, %39, %36 : vector<8x256xi1>, vector<8x256xf32>
    %c1_i32_12 = arith.constant 1 : i32
    %41 = tpu.dynamic_rotate %40 by %c1_i32_12 dim 1 : vector<8x256xf32>, i32 -> vector<8x256xf32>
    %cst_13 = arith.constant 0.000000e+00 : f32
    %42 = vector.shape_cast %24 : vector<1x256xi1> to vector<1x256xi1>
    %43 = vector.broadcast %42 : vector<1x256xi1> to vector<8x256xi1>
    %44 = vector.broadcast %cst_13 : f32 to vector<8x256xf32>
    %45 = arith.select %43, %44, %41 : vector<8x256xi1>, vector<8x256xf32>
    %46 = tpu.concatenate %45, %40 in 0 : vector<8x256xf32>, vector<8x256xf32> -> vector<16x256xf32>
    %c8 = arith.constant 8 : index
    %c0_14 = arith.constant 0 : index
    %47 = vector.load %arg2[%c8, %c0_14] : memref<128x32xf32, #tpu.memory_space<vmem>>, vector<8x16xf32>
    %c8_15 = arith.constant 8 : index
    %c0_16 = arith.constant 0 : index
    %48 = vector.load %arg3[%c8_15, %c0_16] : memref<128x1xf32, #tpu.memory_space<vmem>>, vector<8x1xf32>
    %cst_17 = arith.constant dense<0.000000e+00> : vector<8x256xf32>
    %49 = tpu.matmul %47, %46, %cst_17 {dimension_numbers = #tpu.dot_dimension_numbers<[1], [0], [0], [1], [0, 0, 1, 1], [], []>} : vector<8x16xf32>, vector<16x256xf32>, vector<8x256xf32> -> vector<8x256xf32>
    %50 = vector.broadcast %48 : vector<8x1xf32> to vector<8x256xf32>
    %51 = arith.addf %49, %50 : vector<8x256xf32>
    %cst_18 = arith.constant 0.000000e+00 : f32
    %52 = vector.shape_cast %24 : vector<1x256xi1> to vector<1x256xi1>
    %53 = vector.broadcast %52 : vector<1x256xi1> to vector<8x256xi1>
    %54 = vector.broadcast %cst_18 : f32 to vector<8x256xf32>
    %55 = arith.select %53, %54, %51 : vector<8x256xi1>, vector<8x256xf32>
    %cst_19 = arith.constant 0.000000e+00 : f32
    %56 = vector.broadcast %cst_19 : f32 to vector<8x256xf32>
    %c1_i32_20 = arith.constant 1 : i32
    %57 = tpu.dynamic_rotate %55 by %c1_i32_20 dim 1 : vector<8x256xf32>, i32 -> vector<8x256xf32>
    %cst_21 = arith.constant 0.000000e+00 : f32
    %58 = vector.shape_cast %24 : vector<1x256xi1> to vector<1x256xi1>
    %59 = vector.broadcast %58 : vector<1x256xi1> to vector<8x256xi1>
    %60 = vector.broadcast %cst_21 : f32 to vector<8x256xf32>
    %61 = arith.select %59, %60, %57 : vector<8x256xi1>, vector<8x256xf32>
    %62 = tpu.concatenate %61, %55 in 0 : vector<8x256xf32>, vector<8x256xf32> -> vector<16x256xf32>
    %c16 = arith.constant 16 : index
    %c0_22 = arith.constant 0 : index
    %63 = vector.load %arg2[%c16, %c0_22] : memref<128x32xf32, #tpu.memory_space<vmem>>, vector<16x16xf32>
    %c16_23 = arith.constant 16 : index
    %c0_24 = arith.constant 0 : index
    %64 = vector.load %arg3[%c16_23, %c0_24] : memref<128x1xf32, #tpu.memory_space<vmem>>, vector<16x1xf32>
    %cst_25 = arith.constant dense<0.000000e+00> : vector<16x256xf32>
    %65 = tpu.matmul %63, %62, %cst_25 {dimension_numbers = #tpu.dot_dimension_numbers<[1], [0], [0], [1], [0, 0, 1, 1], [], []>} : vector<16x16xf32>, vector<16x256xf32>, vector<16x256xf32> -> vector<16x256xf32>
    %66 = vector.broadcast %64 : vector<16x1xf32> to vector<16x256xf32>
    %67 = arith.addf %65, %66 : vector<16x256xf32>
    %c2_i32 = arith.constant 2 : i32
    %68 = tpu.dynamic_rotate %67 by %c2_i32 dim 1 : vector<16x256xf32>, i32 -> vector<16x256xf32>
    %c2_i32_26 = arith.constant 2 : i32
    %69 = vector.broadcast %c2_i32_26 : i32 to vector<1x256xi32>
    %70 = arith.cmpi slt, %16, %69 : vector<1x256xi32>
    %cst_27 = arith.constant 0.000000e+00 : f32
    %71 = vector.shape_cast %70 : vector<1x256xi1> to vector<1x256xi1>
    %72 = vector.broadcast %71 : vector<1x256xi1> to vector<16x256xi1>
    %73 = vector.broadcast %cst_27 : f32 to vector<16x256xf32>
    %74 = arith.select %72, %73, %68 : vector<16x256xi1>, vector<16x256xf32>
    %75 = tpu.concatenate %74, %67 in 0 : vector<16x256xf32>, vector<16x256xf32> -> vector<32x256xf32>
    %c32 = arith.constant 32 : index
    %c0_28 = arith.constant 0 : index
    %76 = vector.load %arg2[%c32, %c0_28] : memref<128x32xf32, #tpu.memory_space<vmem>>, vector<16x32xf32>
    %c32_29 = arith.constant 32 : index
    %c0_30 = arith.constant 0 : index
    %77 = vector.load %arg3[%c32_29, %c0_30] : memref<128x1xf32, #tpu.memory_space<vmem>>, vector<16x1xf32>
    %cst_31 = arith.constant dense<0.000000e+00> : vector<16x256xf32>
    %78 = tpu.matmul %76, %75, %cst_31 {dimension_numbers = #tpu.dot_dimension_numbers<[1], [0], [0], [1], [0, 0, 1, 1], [], []>} : vector<16x32xf32>, vector<32x256xf32>, vector<16x256xf32> -> vector<16x256xf32>
    %79 = vector.broadcast %77 : vector<16x1xf32> to vector<16x256xf32>
    %80 = arith.addf %78, %79 : vector<16x256xf32>
    %c4_i32 = arith.constant 4 : i32
    %81 = tpu.dynamic_rotate %80 by %c4_i32 dim 1 : vector<16x256xf32>, i32 -> vector<16x256xf32>
    %c4_i32_32 = arith.constant 4 : i32
    %82 = vector.broadcast %c4_i32_32 : i32 to vector<1x256xi32>
    %83 = arith.cmpi slt, %16, %82 : vector<1x256xi32>
    %cst_33 = arith.constant 0.000000e+00 : f32
    %84 = vector.shape_cast %83 : vector<1x256xi1> to vector<1x256xi1>
    %85 = vector.broadcast %84 : vector<1x256xi1> to vector<16x256xi1>
    %86 = vector.broadcast %cst_33 : f32 to vector<16x256xf32>
    %87 = arith.select %85, %86, %81 : vector<16x256xi1>, vector<16x256xf32>
    %88 = tpu.concatenate %87, %80 in 0 : vector<16x256xf32>, vector<16x256xf32> -> vector<32x256xf32>
    %c48 = arith.constant 48 : index
    %c0_34 = arith.constant 0 : index
    %89 = vector.load %arg2[%c48, %c0_34] : memref<128x32xf32, #tpu.memory_space<vmem>>, vector<16x32xf32>
    %c48_35 = arith.constant 48 : index
    %c0_36 = arith.constant 0 : index
    %90 = vector.load %arg3[%c48_35, %c0_36] : memref<128x1xf32, #tpu.memory_space<vmem>>, vector<16x1xf32>
    %cst_37 = arith.constant dense<0.000000e+00> : vector<16x256xf32>
    %91 = tpu.matmul %89, %88, %cst_37 {dimension_numbers = #tpu.dot_dimension_numbers<[1], [0], [0], [1], [0, 0, 1, 1], [], []>} : vector<16x32xf32>, vector<32x256xf32>, vector<16x256xf32> -> vector<16x256xf32>
    %92 = vector.broadcast %90 : vector<16x1xf32> to vector<16x256xf32>
    %93 = arith.addf %91, %92 : vector<16x256xf32>
    %94 = math.tanh %93 : vector<16x256xf32>
    %95 = vector.extract_strided_slice %94 {offsets = [0, 0], sizes = [8, 256], strides = [1, 1]} : vector<16x256xf32> to vector<8x256xf32>
    %96 = vector.extract_strided_slice %94 {offsets = [8, 0], sizes = [8, 256], strides = [1, 1]} : vector<16x256xf32> to vector<8x256xf32>
    %cst_38 = arith.constant 5.000000e-01 : f32
    %97 = vector.broadcast %cst_38 : f32 to vector<8x256xf32>
    %98 = arith.mulf %97, %96 : vector<8x256xf32>
    %cst_39 = arith.constant 5.000000e-01 : f32
    %99 = vector.broadcast %cst_39 : f32 to vector<8x256xf32>
    %100 = arith.addf %98, %99 : vector<8x256xf32>
    %101 = arith.mulf %95, %100 : vector<8x256xf32>
    %c64 = arith.constant 64 : index
    %c0_40 = arith.constant 0 : index
    %102 = vector.load %arg2[%c64, %c0_40] : memref<128x32xf32, #tpu.memory_space<vmem>>, vector<8x8xf32>
    %c64_41 = arith.constant 64 : index
    %c0_42 = arith.constant 0 : index
    %103 = vector.load %arg3[%c64_41, %c0_42] : memref<128x1xf32, #tpu.memory_space<vmem>>, vector<8x1xf32>
    %cst_43 = arith.constant dense<0.000000e+00> : vector<8x256xf32>
    %104 = tpu.matmul %102, %101, %cst_43 {dimension_numbers = #tpu.dot_dimension_numbers<[1], [0], [0], [1], [0, 0, 1, 1], [], []>} : vector<8x8xf32>, vector<8x256xf32>, vector<8x256xf32> -> vector<8x256xf32>
    %105 = vector.broadcast %103 : vector<8x1xf32> to vector<8x256xf32>
    %106 = arith.addf %104, %105 : vector<8x256xf32>
    %107 = arith.addf %106, %55 : vector<8x256xf32>
    %108 = arith.addf %56, %107 : vector<8x256xf32>
    %c1_i32_44 = arith.constant 1 : i32
    %109 = tpu.dynamic_rotate %107 by %c1_i32_44 dim 1 : vector<8x256xf32>, i32 -> vector<8x256xf32>
    %cst_45 = arith.constant 0.000000e+00 : f32
    %110 = vector.shape_cast %24 : vector<1x256xi1> to vector<1x256xi1>
    %111 = vector.broadcast %110 : vector<1x256xi1> to vector<8x256xi1>
    %112 = vector.broadcast %cst_45 : f32 to vector<8x256xf32>
    %113 = arith.select %111, %112, %109 : vector<8x256xi1>, vector<8x256xf32>
    %114 = tpu.concatenate %113, %107 in 0 : vector<8x256xf32>, vector<8x256xf32> -> vector<16x256xf32>
    %c72 = arith.constant 72 : index
    %c0_46 = arith.constant 0 : index
    %115 = vector.load %arg2[%c72, %c0_46] : memref<128x32xf32, #tpu.memory_space<vmem>>, vector<16x16xf32>
    %c72_47 = arith.constant 72 : index
    %c0_48 = arith.constant 0 : index
    %116 = vector.load %arg3[%c72_47, %c0_48] : memref<128x1xf32, #tpu.memory_space<vmem>>, vector<16x1xf32>
    %cst_49 = arith.constant dense<0.000000e+00> : vector<16x256xf32>
    %117 = tpu.matmul %115, %114, %cst_49 {dimension_numbers = #tpu.dot_dimension_numbers<[1], [0], [0], [1], [0, 0, 1, 1], [], []>} : vector<16x16xf32>, vector<16x256xf32>, vector<16x256xf32> -> vector<16x256xf32>
    %118 = vector.broadcast %116 : vector<16x1xf32> to vector<16x256xf32>
    %119 = arith.addf %117, %118 : vector<16x256xf32>
    %c2_i32_50 = arith.constant 2 : i32
    %120 = tpu.dynamic_rotate %119 by %c2_i32_50 dim 1 : vector<16x256xf32>, i32 -> vector<16x256xf32>
    %cst_51 = arith.constant 0.000000e+00 : f32
    %121 = vector.shape_cast %70 : vector<1x256xi1> to vector<1x256xi1>
    %122 = vector.broadcast %121 : vector<1x256xi1> to vector<16x256xi1>
    %123 = vector.broadcast %cst_51 : f32 to vector<16x256xf32>
    %124 = arith.select %122, %123, %120 : vector<16x256xi1>, vector<16x256xf32>
    %125 = tpu.concatenate %124, %119 in 0 : vector<16x256xf32>, vector<16x256xf32> -> vector<32x256xf32>
    %c88 = arith.constant 88 : index
    %c0_52 = arith.constant 0 : index
    %126 = vector.load %arg2[%c88, %c0_52] : memref<128x32xf32, #tpu.memory_space<vmem>>, vector<16x32xf32>
    %c88_53 = arith.constant 88 : index
    %c0_54 = arith.constant 0 : index
    %127 = vector.load %arg3[%c88_53, %c0_54] : memref<128x1xf32, #tpu.memory_space<vmem>>, vector<16x1xf32>
    %cst_55 = arith.constant dense<0.000000e+00> : vector<16x256xf32>
    %128 = tpu.matmul %126, %125, %cst_55 {dimension_numbers = #tpu.dot_dimension_numbers<[1], [0], [0], [1], [0, 0, 1, 1], [], []>} : vector<16x32xf32>, vector<32x256xf32>, vector<16x256xf32> -> vector<16x256xf32>
    %129 = vector.broadcast %127 : vector<16x1xf32> to vector<16x256xf32>
    %130 = arith.addf %128, %129 : vector<16x256xf32>
    %c4_i32_56 = arith.constant 4 : i32
    %131 = tpu.dynamic_rotate %130 by %c4_i32_56 dim 1 : vector<16x256xf32>, i32 -> vector<16x256xf32>
    %cst_57 = arith.constant 0.000000e+00 : f32
    %132 = vector.shape_cast %83 : vector<1x256xi1> to vector<1x256xi1>
    %133 = vector.broadcast %132 : vector<1x256xi1> to vector<16x256xi1>
    %134 = vector.broadcast %cst_57 : f32 to vector<16x256xf32>
    %135 = arith.select %133, %134, %131 : vector<16x256xi1>, vector<16x256xf32>
    %136 = tpu.concatenate %135, %130 in 0 : vector<16x256xf32>, vector<16x256xf32> -> vector<32x256xf32>
    %c104 = arith.constant 104 : index
    %c0_58 = arith.constant 0 : index
    %137 = vector.load %arg2[%c104, %c0_58] : memref<128x32xf32, #tpu.memory_space<vmem>>, vector<16x32xf32>
    %c104_59 = arith.constant 104 : index
    %c0_60 = arith.constant 0 : index
    %138 = vector.load %arg3[%c104_59, %c0_60] : memref<128x1xf32, #tpu.memory_space<vmem>>, vector<16x1xf32>
    %cst_61 = arith.constant dense<0.000000e+00> : vector<16x256xf32>
    %139 = tpu.matmul %137, %136, %cst_61 {dimension_numbers = #tpu.dot_dimension_numbers<[1], [0], [0], [1], [0, 0, 1, 1], [], []>} : vector<16x32xf32>, vector<32x256xf32>, vector<16x256xf32> -> vector<16x256xf32>
    %140 = vector.broadcast %138 : vector<16x1xf32> to vector<16x256xf32>
    %141 = arith.addf %139, %140 : vector<16x256xf32>
    %142 = math.tanh %141 : vector<16x256xf32>
    %143 = vector.extract_strided_slice %142 {offsets = [0, 0], sizes = [8, 256], strides = [1, 1]} : vector<16x256xf32> to vector<8x256xf32>
    %144 = vector.extract_strided_slice %142 {offsets = [8, 0], sizes = [8, 256], strides = [1, 1]} : vector<16x256xf32> to vector<8x256xf32>
    %cst_62 = arith.constant 5.000000e-01 : f32
    %145 = vector.broadcast %cst_62 : f32 to vector<8x256xf32>
    %146 = arith.mulf %145, %144 : vector<8x256xf32>
    %cst_63 = arith.constant 5.000000e-01 : f32
    %147 = vector.broadcast %cst_63 : f32 to vector<8x256xf32>
    %148 = arith.addf %146, %147 : vector<8x256xf32>
    %149 = arith.mulf %143, %148 : vector<8x256xf32>
    %c120 = arith.constant 120 : index
    %c0_64 = arith.constant 0 : index
    %150 = vector.load %arg2[%c120, %c0_64] : memref<128x32xf32, #tpu.memory_space<vmem>>, vector<8x8xf32>
    %c120_65 = arith.constant 120 : index
    %c0_66 = arith.constant 0 : index
    %151 = vector.load %arg3[%c120_65, %c0_66] : memref<128x1xf32, #tpu.memory_space<vmem>>, vector<8x1xf32>
    %cst_67 = arith.constant dense<0.000000e+00> : vector<8x256xf32>
    %152 = tpu.matmul %150, %149, %cst_67 {dimension_numbers = #tpu.dot_dimension_numbers<[1], [0], [0], [1], [0, 0, 1, 1], [], []>} : vector<8x8xf32>, vector<8x256xf32>, vector<8x256xf32> -> vector<8x256xf32>
    %153 = vector.broadcast %151 : vector<8x1xf32> to vector<8x256xf32>
    %154 = arith.addf %152, %153 : vector<8x256xf32>
    %155 = arith.addf %154, %107 : vector<8x256xf32>
    %156 = arith.addf %108, %155 : vector<8x256xf32>
    %c0_68 = arith.constant 0 : index
    %c0_69 = arith.constant 0 : index
    %c0_70 = arith.constant 0 : index
    %157 = vector.load %arg4[%c0_68, %c0_69, %c0_70] : memref<1x8x256xf32, #tpu.memory_space<vmem>>, vector<1x8x256xf32>
    %158 = vector.shape_cast %157 : vector<1x8x256xf32> to vector<8x256xf32>
    %159 = vector.shape_cast %156 : vector<8x256xf32> to vector<1x8x256xf32>
    tpu.vector_store %arg4[%c0_68, %c0_69, %c0_70], %159 {strides = array<i32>} : memref<1x8x256xf32, #tpu.memory_space<vmem>>, vector<1x8x256xf32>,
    return
  }
  func.func @transform_0(%arg0: i32) -> (i32, i32, i32) {
    %c0_i32 = arith.constant 0 : i32
    %c0_i32_0 = arith.constant 0 : i32
    %c0_i32_1 = arith.constant 0 : i32
    return %arg0, %c0_i32, %c0_i32_0 : i32, i32, i32
  }
  func.func @transform_1(%arg0: i32) -> (i32, i32) {
    %c0_i32 = arith.constant 0 : i32
    %c0_i32_0 = arith.constant 0 : i32
    %c0_i32_1 = arith.constant 0 : i32
    return %c0_i32, %c0_i32_0 : i32, i32
  }
  func.func @transform_2(%arg0: i32) -> (i32, i32) {
    %c0_i32 = arith.constant 0 : i32
    %c0_i32_0 = arith.constant 0 : i32
    %c0_i32_1 = arith.constant 0 : i32
    return %c0_i32, %c0_i32_0 : i32, i32
  }
  func.func @transform_3(%arg0: i32) -> (i32, i32, i32) {
    %c0_i32 = arith.constant 0 : i32
    %c0_i32_0 = arith.constant 0 : i32
    %c0_i32_1 = arith.constant 0 : i32
    return %arg0, %c0_i32, %c0_i32_0 : i32, i32, i32
  }
}

</mosaic_0001>

<bundles_post_ra>
// kernel: tpu_custom_call.1
= control target key start
LH: loop header
LB: loop body
LE: loop exit
PB: predicated region body
PF: predicated region fallthrough
CT: control target
= control target key end

     0   :  { %8 = vsyncpa [#allocation3], 0  ;;  %s1653_s0 = inlined_call_operand.vmem [shape: f32[2,1,256], index: 0, kind: input, shape index: {}]   ;;  %s1654_s1 = inlined_call_operand.vmem [shape: f32[128,32], index: 1, kind: input, shape index: {}]   ;;  %s1655_s2 = inlined_call_operand.vmem [shape: f32[128,1], index: 2, kind: input, shape index: {}]   ;;  %s1656_s3 = inlined_call_operand.hbm [shape: f32[2,8,256], index: 3, kind: output, shape index: {}]  }
   0x1   :  { %10 = vsyncpa [#allocation3 + $0x1], 0  ;;  %s1251_s12 = smov 0   ;;  %s1253_s13 = smov 0  }
   0x2   :  { %s1255_s14 = smov 0   ;;  %s1257_s15 = smov 0  }
   0x3 LB: > { %s1272_s16 = sadd.s32 4294967295, %s1224_s15   ;;  %s1001_s17 = sadd.s32 4294967294, %s1224_s15   ;;  %s1224_s15 = sphi %s1257_s15, %s1670_s15   ;;  %s1220_s14 = sphi %s1255_s14, %s1669_s14   ;;  %s1216_s13 = sphi %s1253_s13, %s1668_s13   ;;  %s1212_s12 = sphi %s1251_s12, %s1667_s12  }
   0x4   : > { %s1276_s18 = sadd.s32 1, %s1224_s15   ;;  %s91_s19 = sadd.s32 1, %s1220_s14 }
   0x5   : > { %s88_s20 = ssub.s32 %s1224_s15, %s1276_s18  ;;  %p101_p0 = scmp.ne.s32.totalorder %s1220_s14, %s1216_s13 }
   0x6   : > { %p89_p1 = scmp.eq.s32.totalorder %s88_s20, 0  ;;  %p102_p2 = scmp.eq.s32.totalorder %s1272_s16, 1 }
   0x7   : > { %p107_p3 = scmp.ne.s32.totalorder %s1216_s13, %s1212_s12  ;;  %p108_p4 = scmp.eq.s32.totalorder %s1001_s17, 1 }
   0x8   : > { %s1287_s21 = scalar_select %p89_p1, %s1220_s14, %s91_s19  }
   0x9   : > { %p1289_p5 = por %p102_p2, %p101_p0  ;;  %p1293_p6 = por %p108_p4, %p107_p3 }
   0xa   : > { %p1004_p7 = scmp.ge.s32.totalorder %s1224_s15, 1  ;;  %p139_p8 = scmp.lt.s32.totalorder %s1224_s15, 3 }
   0xc   : > { %p140_p9 = pnand %p1004_p7, %p139_p8 }
   0xd   : > { %p162_p10 = scmp.lt.s32.totalorder (!%p140_p9), %s1272_s16, 1  ;;  %s1227_s6 = smov (!%p140_p9), 1  }
   0xe   : > { %143 = sbr.rel (%p140_p9) target bundleno = 2274 (0x8e2), region = 32  ;;  %s1230_s11 = smov (!%p140_p9), 4  }
   0xf   : > { %s159_s27 = sand.u32 (!%p140_p9), 1, %s1216_s13   ;;  %s1094_s30 = sshll.u32 (!%p140_p9), %s1272_s16, 4 }
  0x10   : > { %s1182_s20 = scalar_lea.hbm (!%p140_p9), %s1656_s3, 32 }
  0x13   : > { %v194_v0 = vld [vmem:[%s1654_s1] sm:$0xff]  ;;  %v1226_v2 = vmov 0   ;;  %s163_s28 = scalar_select %p162_p10, %s1272_s16, 1  ;;  %v1228_v5 = vmov 1   ;;  %v166_v7 = vlaneseq  ;;  %v251_v34 = vld [vmem:[%s1655_s2 + $0x8] sm:$0xff]  ;;  %v314_v35 = vld [vmem:[%s1655_s2 + $0x18] sm:$0xff] }
  0x14   : > { %v195_v1 = vld [vmem:[%s1655_s2] sm:$0xff]  ;;  %1141 = vset.pattern.permute.xlu1 %v1226_v2  ;;  %1143 = vset.pattern.permute.xlu2 %v1226_v2  ;;  %v250_v38 = vld [vmem:[%s1654_s1 + $0x8] sm:$0xff]  ;;  %vm257_vm4 = vcmask 130048   ;;  %v313_v48 = vld [vmem:[%s1655_s2 + $0x10] sm:$0xff]  ;;  %vm414_vm8 = vcmask 261120   ;;  %vm573_vm12 = vcmask 64512  }
  0x15   : > { %214 = vperm.xlu1 %1141, %v194_v0   ;;  %231 = vperm.xlu2 %1143, %v195_v1   ;;  %s1006_s29 = sshll.u32 %s163_s28, 1  ;;  %v1312_v8 = vand.u32 127, %v166_v7  ;;  %v311_v51 = vld [vmem:[%s1654_s1 + $0x10] sm:$0xff]  ;;  %v312_v54 = vld [vmem:[%s1654_s1 + $0x18] sm:$0xff]  ;;  %s1229_s28 = smov 2  }
  0x16   : > { %1145 = vset.pattern.permute.xlu0 %v1226_v2  ;;  %s165_s5 = scalar_lea.vmem %s1653_s0, %s1006_s29  ;;  %s1005_s29 = sshll.u32 %s159_s27, 4 }
  0x17   : > { %v193_v3 = vld [vmem:[%s165_s5] sm:$0x3]  ;;  %v168_v10 = vadd.s32 128, %v1312_v8  ;;  %vm205_vm0 = vcmp.lt.s32.totalorder %v1312_v8, 1  ;;  %vm385_vm5 = vcmp.lt.s32.totalorder %v1312_v8, 2  ;;  %vm475_vm9 = vcmp.lt.s32.totalorder %v1312_v8, 4  ;;  %s937_s5 = scalar_lea.hbm %s1656_s3, %s1094_s30 }
  0x18   : > { %v197_v4 = vperm.slane %v193_v3, 0  ;;  %v198_v6 = vperm.slane %v193_v3, 1  ;;  %vm1329_vm2 = vmneg %vm205_vm0  ;;  %s161_s7 = scalar_lea.vmem [#allocation2], %s1005_s29  ;;  %s941_s9 = sshll.u32 %s937_s5, 4  ;;  %s942_s9 = int_to_ptr.hbm [resolvable:$true] %s941_s9 }
  0x19   : > { %v1315_v12 = vand.u32 127, %v168_v10  ;;  %vm1418_vm6 = vmneg %vm385_vm5  ;;  %s939_s8 = sshll.u32 %s161_s7, 4  ;;  %s926_s16 = scalar_lea.sflag [#allocation3], %s159_s27  ;;  %s940_s8 = int_to_ptr.vmem [resolvable:$true] %s939_s8 }
  0x1a   : > { %201 = vrot.lane.b32.xlu0 %v197_v4, %s1227_s6  ;;  %vm1462_vm10 = vmneg %vm475_vm9  ;;  %s1176_s10 = sshra.s32 %s942_s9, 4  ;;  %s1177_s10 = int_to_ptr.hbm [resolvable:$true] %s1176_s10 }
  0x1b   : > { %vm209_vm1 = vcmp.lt.s32.totalorder %v1315_v12, 1  ;;  %vm1095_vm7 = vcmp.ge.s32.totalorder %v1315_v12, 2  ;;  %vm1096_vm11 = vcmp.ge.s32.totalorder %v1315_v12, 4  ;;  %s1178_s17 = scalar_lea.hbm %s1177_s10, 16  ;;  %p1183_p0 = scmp.lt.s32.totalorder %s1177_s10, %s1656_s3 }
  0x1c   : > { %vm1335_vm3 = vmneg %vm209_vm1  ;;  %p1179_p11 = scmp.ne.s32.totalorder %s1177_s10, %s1178_s17  ;;  %p1184_p1 = scmp.lt.s32.totalorder %s1182_s20, %s1178_s17 }
  0x1d   : > { %1142 = vset.pattern.permute.xlu1 %v1228_v5 }
  0x1e   : > { %222 = vperm.xlu1 %1142, %v194_v0   ;;  %v402_v0 = vld [vmem:[%s1655_s2 + $0x20] sm:$0xff]  ;;  %p1180_p12 = pnand %p1179_p11, %p1289_p5  ;;  %p1185_p2 = por %p1184_p1, %p1183_p0 }
  0x20   : > { %p1181_p13 = pneg %p1180_p12 }
  0x22   : > { %203 = vrot.lane.b32.xlu0 %v198_v6, %s1227_s6  ;;  %p1186_p3 = pnand %p1185_p2, %p1181_p13 }
  0x26   : > { %1144 = vset.pattern.permute.xlu1 %v1226_v2  ;;  %v403_v2 = vld [vmem:[%s1655_s2 + $0x28] sm:$0xff] }
  0x27   : > { %254 = vperm.xlu1 %1144, %v251_v34  }
  0x2f   : > { %322 = vperm.xlu1 %1144, %v314_v35  }
  0x6f   : > { %v232_v25 = vpop.permute.xlu2 %231 }
  0x87   : > { %v215_v9 = vpop.permute.xlu1 %214 }
  0x8c   : > { %v202_v11 = vpop.permute.xlu0 %201 }
  0x90   : > { %v223_v14 = vpop.permute.xlu1 %222 }
  0x91   : > { %v225_v21 = vmul.f32 %v223_v14, %v197_v4  ;;  %v226_v22 = vmul.f32 %v223_v14, %v198_v6 }
  0x94   : > { %v204_v13 = vpop.permute.xlu0 %203 }
  0x95   : > { %v206_v15 = vsel %vm205_vm0, %v202_v11, %v204_v13  ;;  %v207_v16 = vsel %vm205_vm0, %v204_v13, %v202_v11  ;;  %v400_v11 = vld [vmem:[%s1654_s1 + $0x20] sm:$0xff] }
  0x96   : > { %v210_v17 = vsel %vm205_vm0, 0.0, %v207_v16  ;;  %v211_v18 = vsel %vm209_vm1, 0.0, %v206_v15  ;;  %v401_v15 = vld [vmem:[%s1654_s1 + $0x28] sm:$0xff] }
  0x97   : > { %v217_v19 = vperm.slane %v210_v17, 0  ;;  %v218_v20 = vperm.slane %v211_v18, 0 }
  0x99   : > { %v219_v23 = vmul.f32 %v217_v19, %v215_v9  ;;  %v220_v24 = vmul.f32 %v218_v20, %v215_v9  ;;  %v255_v41 = vpop.permute.xlu1 %254 }
  0x9b   : > { %v227_v26 = vadd.f32 %v225_v21, %v219_v23  ;;  %v228_v28 = vadd.f32 %v226_v22, %v220_v24 }
  0x9d   : > { %v234_v30 = vadd.f32 %v232_v25, %v227_v26  ;;  %v235_v31 = vadd.f32 %v232_v25, %v228_v28  ;;  %v492_v25 = vld [vmem:[%s1655_s2 + $0x30] sm:$0xff]  ;;  %v493_v28 = vld [vmem:[%s1655_s2 + $0x38] sm:$0xff] }
  0x9f   : > { %1008 = vmatpush.msk.msra.mxu0 %vm1329_vm2, %v234_v30  ;;  %1013 = vmatpush.msk.msra.mxu1 %vm1335_vm3, %v235_v31  ;;  %v241_v32 = vsel %vm209_vm1, 0.0, %v235_v31  ;;  %v240_v33 = vsel %vm205_vm0, 0.0, %v234_v30 }
  0xa0   : > { %244 = vrot.lane.b32.xlu0 %v241_v32, %s1227_s6  ;;  %242 = vrot.lane.b32.xlu2 %v240_v33, %s1227_s6 }
  0xa1   : > { %v323_v59 = vpop.permute.xlu1 %322 }
  0xfa   : > { %v243_v36 = vpop.permute.xlu2 %242 }
 0x112   : > { %v245_v37 = vpop.permute.xlu0 %244 }
 0x113   : > { %v247_v39 = vsel %vm205_vm0, %v245_v37, %v243_v36  ;;  %v246_v40 = vsel %vm205_vm0, %v243_v36, %v245_v37  ;;  %v490_v37 = vld [vmem:[%s1654_s1 + $0x30] sm:$0xff] }
 0x114   : > { %1010 = vmatpush.msk.msra.mxu0 %vm1329_vm2, %v247_v39  ;;  %1015 = vmatpush.msk.msra.mxu1 %vm1335_vm3, %v246_v40  ;;  %v491_v40 = vld [vmem:[%s1654_s1 + $0x38] sm:$0xff] }
 0x115   : > { %1011 = vmatmul.msk.f32.vlgmr.msra.gmra.mxu0 %vm257_vm4, %v250_v38  ;;  %1016 = vmatmul.msk.f32.vlgmr.msra.gmra.mxu1 %vm257_vm4, %v250_v38 }
 0x192   : > { %v278_v42 = vpop.f32.mrf.mxu0  ;;  %v298_v43 = vpop.f32.mrf.mxu1 }
 0x193   : > { %v279_v44 = vadd.f32 %v278_v42, %v255_v41  ;;  %v299_v45 = vadd.f32 %v298_v43, %v255_v41  ;;  %v567_v41 = vld [vmem:[%s1655_s2 + $0x40] sm:$0xff] }
 0x195   : > { %1018 = vmatpush.msk.msra.mxu2 %vm1329_vm2, %v279_v44  ;;  %1024 = vmatpush.msk.msra.mxu3 %vm1335_vm3, %v299_v45  ;;  %v1374_v46 = vsel %vm205_vm0, 0.0, %v279_v44  ;;  %v1378_v47 = vsel %vm209_vm1, 0.0, %v299_v45 }
 0x196   : > { %303 = vrot.lane.b32.xlu2 %v1374_v46, %s1227_s6  ;;  %305 = vrot.lane.b32.xlu0 %v1378_v47, %s1227_s6 }
 0x19e   : > { %317 = vperm.xlu2 %1143, %v313_v48  }
 0x1f0   : > { %v304_v49 = vpop.permute.xlu2 %303 }
 0x1f8   : > { %v318_v55 = vpop.permute.xlu2 %317 }
 0x208   : > { %v306_v50 = vpop.permute.xlu0 %305 }
 0x209   : > { %v308_v52 = vsel %vm205_vm0, %v306_v50, %v304_v49  ;;  %v307_v53 = vsel %vm205_vm0, %v304_v49, %v306_v50 }
 0x20a   : > { %1020 = vmatpush.msk.msra.mxu2 %vm1329_vm2, %v308_v52  ;;  %1026 = vmatpush.msk.msra.mxu3 %vm1335_vm3, %v307_v53 }
 0x20b   : > { %1021 = vmatmul.msk.f32.vlgmr.msra.gmra.mxu2 %vm257_vm4, %v311_v51  ;;  %1027 = vmatmul.msk.f32.vlgmr.msra.gmra.mxu3 %vm257_vm4, %v311_v51 }
 0x213   : > { %1022 = vmatmul.msk.f32.gmra.mxu2 %vm257_vm4, %v312_v54  ;;  %1028 = vmatmul.msk.f32.gmra.mxu3 %vm257_vm4, %v312_v54 }
 0x28e   : > { %v348_v56 = vpop.f32.mrf.mxu2  ;;  %v371_v57 = vpop.f32.mrf.mxu3 }
 0x28f   : > { %v349_v58 = vadd.f32 %v348_v56, %v318_v55  ;;  %v372_v1 = vadd.f32 %v371_v57, %v318_v55 }
 0x291   : > { %377 = vrot.lane.b32.xlu2 %v349_v58, %s1229_s28 }
 0x296   : > { %v351_v60 = vpop.f32.mrf.mxu2  ;;  %v374_v61 = vpop.f32.mrf.mxu3 }
 0x297   : > { %v352_v62 = vadd.f32 %v351_v60, %v323_v59  ;;  %v375_v63 = vadd.f32 %v374_v61, %v323_v59 }
 0x299   : > { %379 = vrot.lane.b32.xlu0 %v352_v62, %s1229_s28  ;;  %433 = vmatpush.msrb.mxu0 %v352_v62 }
 0x29a   : > { %406 = vperm.xlu2 %1143, %v402_v0   ;;  %383 = vrot.lane.b32.xlu1 %v375_v63, %s1229_s28 }
 0x29b   : > { %456 = vmatpush.msrb.mxu1 %v375_v63  ;;  %434 = vmatpush.msrb.mxu0 %v349_v58  ;;  %v566_v63 = vld [vmem:[%s1654_s1 + $0x40] sm:$0xff] }
 0x29d   : > { %457 = vmatpush.msrb.mxu1 %v372_v1 }
 0x2a1   : > { %381 = vrot.lane.b32.xlu0 %v372_v1, %s1229_s28 }
 0x2a2   : > { %411 = vperm.xlu1 %1144, %v403_v2  }
 0x2eb   : > { %v378_v9 = vpop.permute.xlu2 %377 }
 0x2f4   : > { %v407_v16 = vpop.permute.xlu2 %406 }
 0x30b   : > { %v380_v3 = vpop.permute.xlu0 %379 }
 0x30c   : > { %v384_v5 = vpop.permute.xlu1 %383 }
 0x30d   : > { %v389_v6 = vsel %vm385_vm5, %v384_v5, %v380_v3  ;;  %v387_v7 = vsel %vm385_vm5, %v380_v3, %v384_v5 }
 0x30e   : > { %1030 = vmatpush.msk.msrb.mxu0 %vm1418_vm6, %v389_v6  ;;  %1036 = vmatpush.msk.msrb.mxu1 %vm1095_vm7, %v387_v7 }
 0x313   : > { %v382_v10 = vpop.permute.xlu0 %381 }
 0x314   : > { %v388_v13 = vsel %vm385_vm5, %v382_v10, %v378_v9  ;;  %v386_v14 = vsel %vm385_vm5, %v378_v9, %v382_v10  ;;  %v412_v20 = vpop.permute.xlu1 %411  ;;  %v632_v10 = vld [vmem:[%s1655_s2 + $0x50] sm:$0xff] }
 0x315   : > { %1032 = vmatpush.msk.msrb.mxu0 %vm1418_vm6, %v388_v13  ;;  %1038 = vmatpush.msk.msrb.mxu1 %vm1095_vm7, %v386_v14  ;;  %v629_v13 = vld [vmem:[%s1654_s1 + $0x48] sm:$0xff] }
 0x316   : > { %1033 = vmatmul.msk.f32.vlgmr.msrb.gmra.mxu0 %vm414_vm8, %v400_v11  ;;  %1039 = vmatmul.msk.f32.vlgmr.msrb.gmra.mxu1 %vm414_vm8, %v400_v11 }
 0x31e   : > { %1034 = vmatmul.msk.f32.gmra.mxu0 %vm414_vm8, %v401_v15  ;;  %1040 = vmatmul.msk.f32.gmra.mxu1 %vm414_vm8, %v401_v15 }
 0x393   : > { %v438_v17 = vpop.f32.mrf.mxu0  ;;  %v461_v18 = vpop.f32.mrf.mxu1 }
 0x394   : > { %v439_v19 = vadd.f32 %v438_v17, %v407_v16  ;;  %v462_v26 = vadd.f32 %v461_v18, %v407_v16  ;;  %v630_v16 = vld [vmem:[%s1654_s1 + $0x50] sm:$0xff] }
 0x396   : > { %467 = vrot.lane.b32.xlu2 %v439_v19, %s1230_s11 }
 0x39b   : > { %v441_v21 = vpop.f32.mrf.mxu0  ;;  %v464_v22 = vpop.f32.mrf.mxu1 }
 0x39c   : > { %v442_v23 = vadd.f32 %v441_v21, %v412_v20  ;;  %v465_v24 = vadd.f32 %v464_v22, %v412_v20 }
 0x39e   : > { %469 = vrot.lane.b32.xlu0 %v442_v23, %s1230_s11  ;;  %522 = vmatpush.msrb.mxu2 %v442_v23 }
 0x39f   : > { %496 = vperm.xlu2 %1143, %v492_v25   ;;  %473 = vrot.lane.b32.xlu1 %v465_v24, %s1230_s11 }
 0x3a0   : > { %545 = vmatpush.msrb.mxu3 %v465_v24  ;;  %523 = vmatpush.msrb.mxu2 %v439_v19  ;;  %v713_v24 = vld [vmem:[%s1655_s2 + $0x58] sm:$0xff] }
 0x3a2   : > { %546 = vmatpush.msrb.mxu3 %v462_v26 }
 0x3a6   : > { %471 = vrot.lane.b32.xlu0 %v462_v26, %s1230_s11  ;;  %v714_v26 = vld [vmem:[%s1655_s2 + $0x60] sm:$0xff] }
 0x3a7   : > { %501 = vperm.xlu1 %1144, %v493_v28  }
 0x3ae   : > { %570 = vperm.xlu0 %1145, %v567_v41  }
 0x3f0   : > { %v468_v35 = vpop.permute.xlu2 %467 }
 0x3f9   : > { %v497_v51 = vpop.permute.xlu2 %496 }
 0x410   : > { %v470_v30 = vpop.permute.xlu0 %469 }
 0x411   : > { %v474_v32 = vpop.permute.xlu1 %473 }
 0x412   : > { %v479_v33 = vsel %vm475_vm9, %v474_v32, %v470_v30  ;;  %v477_v34 = vsel %vm475_vm9, %v470_v30, %v474_v32 }
 0x413   : > { %1042 = vmatpush.msk.msrb.mxu2 %vm1462_vm10, %v479_v33  ;;  %1048 = vmatpush.msk.msrb.mxu3 %vm1096_vm11, %v477_v34 }
 0x418   : > { %v472_v36 = vpop.permute.xlu0 %471 }
 0x419   : > { %v478_v38 = vsel %vm475_vm9, %v472_v36, %v468_v35  ;;  %v476_v39 = vsel %vm475_vm9, %v468_v35, %v472_v36  ;;  %v502_v44 = vpop.permute.xlu1 %501  ;;  %v711_v36 = vld [vmem:[%s1654_s1 + $0x58] sm:$0xff] }
 0x41a   : > { %1044 = vmatpush.msk.msrb.mxu2 %vm1462_vm10, %v478_v38  ;;  %1050 = vmatpush.msk.msrb.mxu3 %vm1096_vm11, %v476_v39  ;;  %v712_v39 = vld [vmem:[%s1654_s1 + $0x60] sm:$0xff] }
 0x41b   : > { %1045 = vmatmul.msk.f32.vlgmr.msrb.gmra.mxu2 %vm414_vm8, %v490_v37  ;;  %1051 = vmatmul.msk.f32.vlgmr.msrb.gmra.mxu3 %vm414_vm8, %v490_v37 }
 0x420   : > { %v571_v1 = vpop.permute.xlu0 %570 }
 0x423   : > { %1046 = vmatmul.msk.f32.gmra.mxu2 %vm414_vm8, %v491_v40  ;;  %1052 = vmatmul.msk.f32.gmra.mxu3 %vm414_vm8, %v491_v40 }
 0x49e   : > { %v527_v42 = vpop.f32.mrf.mxu2  ;;  %v550_v43 = vpop.f32.mrf.mxu3 }
 0x49f   : > { %v528_v52 = vadd.f32 %v527_v42, %v497_v51  ;;  %v551_v53 = vadd.f32 %v550_v43, %v497_v51 }
 0x4a6   : > { %v530_v45 = vpop.f32.mrf.mxu2  ;;  %v553_v48 = vpop.f32.mrf.mxu3 }
 0x4a7   : > { %v531_v49 = vadd.f32 %v530_v45, %v502_v44  ;;  %v554_v50 = vadd.f32 %v553_v48, %v502_v44 }
 0x4a9   : > { %1146 = vtanh.f32 %v531_v49 }
 0x4aa   : > { %1148 = vtanh.f32 %v554_v50  ;;  %v795_v50 = vld [vmem:[%s1655_s2 + $0x68] sm:$0xff] }
 0x4ab   : > { %1150 = vtanh.f32 %v528_v52  ;;  %v796_v52 = vld [vmem:[%s1655_s2 + $0x70] sm:$0xff] }
 0x4ac   : > { %1152 = vtanh.f32 %v551_v53  ;;  %v870_v53 = vld [vmem:[%s1655_s2 + $0x78] sm:$0xff] }
 0x4af   : > { %v1147_v54 = vpop.eup %1146 }
 0x4b0   : > { %v1149_v55 = vpop.eup %1148  ;;  %v560_v56 = vmul.f32 0.5, %v1147_v54 }
 0x4b1   : > { %v561_v57 = vmul.f32 0.5, %v1149_v55  ;;  %v1151_v59 = vpop.eup %1150 }
 0x4b2   : > { %v562_v58 = vadd.f32 0.5, %v560_v56  ;;  %v1153_v61 = vpop.eup %1152 }
 0x4b3   : > { %v563_v60 = vadd.f32 0.5, %v561_v57 }
 0x4b4   : > { %v564_v62 = vmul.f32 %v1151_v59, %v562_v58 }
 0x4b5   : > { %v565_v0 = vmul.f32 %v1153_v61, %v563_v60  ;;  %v793_v60 = vld [vmem:[%s1654_s1 + $0x68] sm:$0xff] }
 0x4b6   : > { %592 = vmatpush.msra.mxu0 %v564_v62 }
 0x4b7   : > { %612 = vmatpush.msra.mxu1 %v565_v0  ;;  %1053 = vmatmul.msk.f32.vlgmr.msra.gmra.mxu0 %vm573_vm12, %v566_v63 }
 0x4b8   : > { %1054 = vmatmul.msk.f32.vlgmr.msra.gmra.mxu1 %vm573_vm12, %v566_v63  ;;  %v794_v63 = vld [vmem:[%s1654_s1 + $0x70] sm:$0xff] }
 0x534   : > { %v594_v2 = vpop.f32.mrf.mxu0 }
 0x535   : > { %v595_v3 = vadd.f32 %v594_v2, %v571_v1  ;;  %v614_v5 = vpop.f32.mrf.mxu1 }
 0x536   : > { %v615_v6 = vadd.f32 %v614_v5, %v571_v1 }
 0x537   : > { %v1502_v7 = vadd.f32 %v595_v3, %v1374_v46  ;;  %v631_v46 = vld [vmem:[%s1655_s2 + $0x48] sm:$0xff] }
 0x538   : > { %v1505_v9 = vadd.f32 %v615_v6, %v1378_v47 }
 0x539   : > { %621 = vrot.lane.b32.xlu1 %v1502_v7, %s1227_s6  ;;  %663 = vmatpush.msrb.mxu0 %v1502_v7 }
 0x53a   : > { %623 = vrot.lane.b32.xlu2 %v1505_v9, %s1227_s6  ;;  %686 = vmatpush.msrb.mxu1 %v1505_v9 }
 0x541   : > { %640 = vperm.xlu1 %1144, %v632_v10  }
 0x542   : > { %635 = vperm.xlu2 %1143, %v631_v46  }
 0x594   : > { %v624_v47 = vpop.permute.xlu2 %623 }
 0x59c   : > { %v636_v17 = vpop.permute.xlu2 %635 }
 0x5ab   : > { %v622_v11 = vpop.permute.xlu1 %621 }
 0x5ac   : > { %v625_v14 = vsel %vm205_vm0, %v622_v11, %v624_v47  ;;  %v626_v15 = vsel %vm205_vm0, %v624_v47, %v622_v11 }
 0x5ad   : > { %1056 = vmatpush.msk.msrb.mxu0 %vm1329_vm2, %v626_v15  ;;  %1060 = vmatpush.msk.msrb.mxu1 %vm1335_vm3, %v625_v14 }
 0x5ae   : > { %1057 = vmatmul.msk.f32.vlgmr.msrb.gmra.mxu0 %vm257_vm4, %v629_v13  ;;  %1061 = vmatmul.msk.f32.vlgmr.msrb.gmra.mxu1 %vm257_vm4, %v629_v13 }
 0x5b3   : > { %v641_v29 = vpop.permute.xlu1 %640 }
 0x5b6   : > { %1058 = vmatmul.msk.f32.gmra.mxu0 %vm257_vm4, %v630_v16  ;;  %1062 = vmatmul.msk.f32.gmra.mxu1 %vm257_vm4, %v630_v16 }
 0x62b   : > { %v666_v18 = vpop.f32.mrf.mxu0  ;;  %v689_v19 = vpop.f32.mrf.mxu1 }
 0x62c   : > { %v667_v27 = vadd.f32 %v666_v18, %v636_v17  ;;  %v690_v25 = vadd.f32 %v689_v19, %v636_v17  ;;  %v869_v19 = vld [vmem:[%s1654_s1 + $0x78] sm:$0xff] }
 0x62e   : > { %695 = vrot.lane.b32.xlu2 %v667_v27, %s1229_s28 }
 0x633   : > { %v669_v20 = vpop.f32.mrf.mxu0  ;;  %v692_v21 = vpop.f32.mrf.mxu1 }
 0x634   : > { %v670_v22 = vadd.f32 %v669_v20, %v641_v29  ;;  %v693_v23 = vadd.f32 %v692_v21, %v641_v29 }
 0x636   : > { %697 = vrot.lane.b32.xlu0 %v670_v22, %s1229_s28  ;;  %743 = vmatpush.msra.mxu2 %v670_v22 }
 0x637   : > { %717 = vperm.xlu2 %1143, %v713_v24   ;;  %701 = vrot.lane.b32.xlu1 %v693_v23, %s1229_s28 }
 0x638   : > { %766 = vmatpush.msra.mxu3 %v693_v23  ;;  %744 = vmatpush.msra.mxu2 %v667_v27 }
 0x63a   : > { %767 = vmatpush.msra.mxu3 %v690_v25 }
 0x63e   : > { %699 = vrot.lane.b32.xlu0 %v690_v25, %s1229_s28 }
 0x63f   : > { %722 = vperm.xlu1 %1144, %v714_v26  }
 0x688   : > { %v696_v34 = vpop.permute.xlu2 %695 }
 0x691   : > { %v718_v40 = vpop.permute.xlu2 %717 }
 0x6a8   : > { %v698_v28 = vpop.permute.xlu0 %697 }
 0x6a9   : > { %v702_v30 = vpop.permute.xlu1 %701 }
 0x6aa   : > { %v704_v32 = vsel %vm385_vm5, %v698_v28, %v702_v30  ;;  %v706_v33 = vsel %vm385_vm5, %v702_v30, %v698_v28 }
 0x6ab   : > { %1064 = vmatpush.msk.msra.mxu2 %vm1418_vm6, %v706_v33  ;;  %1070 = vmatpush.msk.msra.mxu3 %vm1095_vm7, %v704_v32 }
 0x6b0   : > { %v700_v35 = vpop.permute.xlu0 %699 }
 0x6b1   : > { %v703_v37 = vsel %vm385_vm5, %v696_v34, %v700_v35  ;;  %v705_v38 = vsel %vm385_vm5, %v700_v35, %v696_v34  ;;  %v723_v43 = vpop.permute.xlu1 %722 }
 0x6b2   : > { %1066 = vmatpush.msk.msra.mxu2 %vm1418_vm6, %v705_v38  ;;  %1072 = vmatpush.msk.msra.mxu3 %vm1095_vm7, %v703_v37 }
 0x6b3   : > { %1067 = vmatmul.msk.f32.vlgmr.msra.gmra.mxu2 %vm414_vm8, %v711_v36  ;;  %1073 = vmatmul.msk.f32.vlgmr.msra.gmra.mxu3 %vm414_vm8, %v711_v36 }
 0x6bb   : > { %1068 = vmatmul.msk.f32.gmra.mxu2 %vm414_vm8, %v712_v39  ;;  %1074 = vmatmul.msk.f32.gmra.mxu3 %vm414_vm8, %v712_v39 }
 0x736   : > { %v748_v41 = vpop.f32.mrf.mxu2  ;;  %v771_v42 = vpop.f32.mrf.mxu3 }
 0x737   : > { %v749_v4 = vadd.f32 %v748_v41, %v718_v40  ;;  %v772_v51 = vadd.f32 %v771_v42, %v718_v40 }
 0x739   : > { %777 = vrot.lane.b32.xlu2 %v749_v4, %s1230_s11 }
 0x73e   : > { %v751_v44 = vpop.f32.mrf.mxu2  ;;  %v774_v45 = vpop.f32.mrf.mxu3 }
 0x73f   : > { %v752_v48 = vadd.f32 %v751_v44, %v723_v43  ;;  %v775_v49 = vadd.f32 %v774_v45, %v723_v43 }
 0x741   : > { %779 = vrot.lane.b32.xlu0 %v752_v48, %s1230_s11  ;;  %825 = vmatpush.msra.mxu0 %v752_v48 }
 0x742   : > { %799 = vperm.xlu2 %1143, %v795_v50   ;;  %783 = vrot.lane.b32.xlu1 %v775_v49, %s1230_s11 }
 0x743   : > { %848 = vmatpush.msra.mxu1 %v775_v49  ;;  %826 = vmatpush.msra.mxu0 %v749_v4 }
 0x745   : > { %849 = vmatpush.msra.mxu1 %v772_v51 }
 0x749   : > { %781 = vrot.lane.b32.xlu0 %v772_v51, %s1230_s11 }
 0x74a   : > { %804 = vperm.xlu1 %1144, %v796_v52  }
 0x751   : > { %873 = vperm.xlu0 %1145, %v870_v53  }
 0x793   : > { %v778_v58 = vpop.permute.xlu2 %777 }
 0x79c   : > { %v800_v5 = vpop.permute.xlu2 %799 }
 0x7b3   : > { %v780_v54 = vpop.permute.xlu0 %779 }
 0x7b4   : > { %v784_v55 = vpop.permute.xlu1 %783 }
 0x7b5   : > { %v786_v56 = vsel %vm475_vm9, %v780_v54, %v784_v55  ;;  %v788_v57 = vsel %vm475_vm9, %v784_v55, %v780_v54 }
 0x7b6   : > { %1076 = vmatpush.msk.msra.mxu0 %vm1462_vm10, %v788_v57  ;;  %1082 = vmatpush.msk.msra.mxu1 %vm1096_vm11, %v786_v56 }
 0x7bb   : > { %v782_v59 = vpop.permute.xlu0 %781 }
 0x7bc   : > { %v785_v61 = vsel %vm475_vm9, %v778_v58, %v782_v59  ;;  %v787_v62 = vsel %vm475_vm9, %v782_v59, %v778_v58  ;;  %v805_v1 = vpop.permute.xlu1 %804 }
 0x7bd   : > { %1078 = vmatpush.msk.msra.mxu0 %vm1462_vm10, %v787_v62  ;;  %1084 = vmatpush.msk.msra.mxu1 %vm1096_vm11, %v785_v61 }
 0x7be   : > { %1079 = vmatmul.msk.f32.vlgmr.msra.gmra.mxu0 %vm414_vm8, %v793_v60  ;;  %1085 = vmatmul.msk.f32.vlgmr.msra.gmra.mxu1 %vm414_vm8, %v793_v60 }
 0x7c3   : > { %v874_v29 = vpop.permute.xlu0 %873 }
 0x7c6   : > { %1080 = vmatmul.msk.f32.gmra.mxu0 %vm414_vm8, %v794_v63  ;;  %1086 = vmatmul.msk.f32.gmra.mxu1 %vm414_vm8, %v794_v63 }
 0x83b   : > { %v830_v8 = vpop.f32.mrf.mxu0  ;;  %v853_v0 = vpop.f32.mrf.mxu1 }
 0x83c   : > { %v831_v6 = vadd.f32 %v830_v8, %v800_v5  ;;  %v854_v10 = vadd.f32 %v853_v0, %v800_v5 }
 0x843   : > { %v833_v31 = vpop.f32.mrf.mxu0  ;;  %v856_v2 = vpop.f32.mrf.mxu1 }
 0x844   : > { %v834_v3 = vadd.f32 %v833_v31, %v805_v1  ;;  %v857_v12 = vadd.f32 %v856_v2, %v805_v1 }
 0x846   : > { %1154 = vtanh.f32 %v834_v3 }
 0x847   : > { %1156 = vtanh.f32 %v857_v12 }
 0x848   : > { %1158 = vtanh.f32 %v831_v6 }
 0x849   : > { %1160 = vtanh.f32 %v854_v10 }
 0x84c   : > { %v1155_v46 = vpop.eup %1154 }
 0x84d   : > { %v1157_v47 = vpop.eup %1156  ;;  %v863_v11 = vmul.f32 0.5, %v1155_v46 }
 0x84e   : > { %v864_v13 = vmul.f32 0.5, %v1157_v47  ;;  %v1159_v15 = vpop.eup %1158 }
 0x84f   : > { %v865_v14 = vadd.f32 0.5, %v863_v11  ;;  %v1161_v17 = vpop.eup %1160 }
 0x850   : > { %v866_v16 = vadd.f32 0.5, %v864_v13 }
 0x851   : > { %v867_v18 = vmul.f32 %v1159_v15, %v865_v14 }
 0x852   : > { %v868_v27 = vmul.f32 %v1161_v17, %v866_v16 }
 0x853   : > { %894 = vmatpush.msrb.mxu2 %v867_v18 }
 0x854   : > { %914 = vmatpush.msrb.mxu3 %v868_v27  ;;  %1087 = vmatmul.msk.f32.vlgmr.msrb.gmra.mxu2 %vm573_vm12, %v869_v19 }
 0x855   : > { %1088 = vmatmul.msk.f32.vlgmr.msrb.gmra.mxu3 %vm573_vm12, %v869_v19 }
 0x8d7   : > { %v896_v20 = vpop.f32.mrf.mxu2 }
 0x8d8   : > { %v897_v21 = vadd.f32 %v896_v20, %v874_v29  ;;  %v916_v22 = vpop.f32.mrf.mxu3 }
 0x8d9   : > { %v917_v23 = vadd.f32 %v916_v22, %v874_v29 }
 0x8da   : > { %v919_v24 = vadd.f32 %v897_v21, %v1502_v7 }
 0x8db   : > { %v920_v25 = vadd.f32 %v917_v23, %v1505_v9 }
 0x8dc   : > { %v921_v26 = vadd.f32 %v919_v24, %v1502_v7 }
 0x8dd   : > { %v922_v28 = vadd.f32 %v920_v25, %v1505_v9 }
 0x8de   : > { %923 = vst [vmem:[%s161_s7] sm:$0xff] %v921_v26 }
 0x8df   : > { %924 = vst [vmem:[%s161_s7 + $0x8] sm:$0xff] %v922_v28 }
 0x8e0   : > { %1189 = shalt.err (!%p1186_p3)
}
 0x8e1   : > { %1097 = dma.vmem_to_hbm [thread:$0]  (%p1289_p5), %s940_s8, 256, %s942_s9, %s926_s16  }
 0x8e2 PF: > { %p1103_p4 = scmp.ge.s32.totalorder %s1224_s15, 2  ;;  %s953_s25 = sand.u32 1, %s1212_s12  }
 0x8e3   : > { %s954_s26 = scalar_lea.sflag [#allocation3], %s953_s25 }
 0x8e4   : > { %p1100_p7 = pnand %p1103_p4, %p1293_p6 }
 0x8e6   : > { %p1101_p8 = pneg %p1100_p7 }
 0x8e8   : > { %1207 = dma.done.wait (%p1101_p8), %s954_s26, 256  }
 0x8e9   : > { %1209 = vsyncadd (%p1101_p8), %s954_s26, 4294967040  ;;  %p13_p9 = scmp.ge.s32.totalorder %s1276_s18, 4   ;;  %s1667_s12 = smov %s1216_s13 }
 0x8ea   : > { %s1668_s13 = smov %s1220_s14  ;;  %s1669_s14 = smov %s1287_s21 }
 0x8eb   : > { %s1670_s15 = smov %s1276_s18  ;;  %15 = sbr.rel (!%p13_p9) target bundleno = 3 (0x3), region = 67 }
 0x8f0   :  { %960 = vsyncpa [#allocation3], 1 }
 0x8f1   :  { %962 = vsyncpa [#allocation3 + $0x1], 1 }

</bundles_post_ra>
